<compile_context>
chip_gen: v7x
topology: tpu7x:2x2x1
jax: 0.10.0
libtpu: 0.0.40
codegen_flags: <defaults>
</compile_context>

<pallas_src>
import functools

import jax
import jax.numpy as jnp
import numpy as np
from jax import lax
from jax.experimental import pallas as pl
from jax.experimental.pallas import tpu as pltpu


def _cape_kernel(ctx_ref, neg_ref, poi_in_ref, table_ref, out_ref, *, num_sampled):
    """Per batch tile:
         scores[b, v] = <poi_in[b], table[v]>            (one MXU matmul)
         out[0,   b]  =  scores[b, context[b]]           (target loss)
         out[1+j, b]  = -scores[b, neg_idx[b, j]]        (negative loss)
       Output block is (K+1, TB): batch last => lane-dense stores.
    """
    poi_in = poi_in_ref[...]                     # (TB, D) f32
    table = table_ref[...]                       # (V,  D) f32

    # (TB, D) . (V, D)^T on the MXU, full f32 precision (matches the reference).
    scores = lax.dot_general(
        poi_in, table, (((1,), (1,)), ((), ())),
        preferred_element_type=jnp.float32,
        precision=jax.lax.Precision.HIGHEST)     # (TB, V)

    tb, vocab = scores.shape
    vocab_iota = lax.broadcasted_iota(jnp.int32, (tb, vocab), 1)

    # Target: vectorized one-hot selection over the vocab (lane) axis.
    ctx = ctx_ref[...]                           # (TB, 1) int32
    tgt = jnp.sum(jnp.where(vocab_iota == ctx, scores, 0.0), axis=-1)   # (TB,)
    out_ref[0, :] = tgt

    # Negatives: K static, fully unrolled; 2-D VPU compare+select+reduce each.
    neg = neg_ref[...]                           # (TB, K) int32
    for j in range(num_sampled):
        sel = jnp.where(vocab_iota == neg[:, j:j + 1], scores, 0.0)
        out_ref[j + 1, :] = -jnp.sum(sel, axis=-1)


def _pick_batch_tile(batch):
    """Batch tile selection.

    - small batches: one block covering the (8-aligned) batch — the lane-dense
      output block then equals the full array, satisfying the (8,128) rule.
    - larger batches: 128/256-row tiles (multiples of 128 lanes for the output
      block), giving >= 2 grid blocks so v7x's two TensorCores both get work
      and the BlockSpec pipeline can overlap DMA with compute.
    """
    if batch <= 256:
        return ((batch + 7) // 8) * 8
    if batch <= 2048:
        return 128
    return 256


def cape_forward_pallas(embedded_poi_in, poi_table, context, neg_idx):
    """Fused scores-matmul + target/negative selection in one Pallas kernel."""
    batch, dim = embedded_poi_in.shape
    num_sampled = neg_idx.shape[1]
    vocab = poi_table.shape[0]
    k1 = num_sampled + 1

    tb = _pick_batch_tile(batch)
    nblk = -(-batch // tb)            # ceil
    padded = nblk * tb

    if padded != batch:
        pad = padded - batch
        embedded_poi_in = jnp.pad(embedded_poi_in, ((0, pad), (0, 0)))
        context = jnp.pad(context, ((0, pad),), constant_values=0)   # padding row 0
        neg_idx = jnp.pad(neg_idx, ((0, pad), (0, 0)), constant_values=1)

    ctx2 = context.reshape(padded, 1).astype(jnp.int32)
    neg2 = neg_idx.astype(jnp.int32)
    poi_in = embedded_poi_in.astype(jnp.float32)
    table = poi_table.astype(jnp.float32)

    kernel = functools.partial(_cape_kernel, num_sampled=num_sampled)

    # Advisory cost hint so XLA can overlap neighbours with this small kernel.
    flops = 2 * padded * vocab * dim + 3 * padded * k1 * vocab
    bytes_accessed = 4 * (vocab * dim + padded * dim
                          + padded * (1 + num_sampled)     # int32 indices
                          + padded * k1)                   # output
    cost = pl.CostEstimate(flops=flops, transcendentals=0,
                           bytes_accessed=bytes_accessed)

    # Explicit VMEM budget: double-buffered tiles + table (pipeline allocates
    # it twice even though its block index is constant) + matmul/one-hot temps.
    vmem_bytes = 4 * (2 * vocab * dim
                      + 2 * tb * (dim + 1 + num_sampled + k1)
                      + 6 * tb * max(vocab, 128))
    vmem_limit = int(min(max(2 * vmem_bytes, 16 << 20), 48 << 20))

    out = pl.pallas_call(
        kernel,
        out_shape=jax.ShapeDtypeStruct((k1, padded), jnp.float32),
        grid=(nblk,),
        in_specs=[
            pl.BlockSpec((tb, 1), lambda i: (i, 0)),             # context
            pl.BlockSpec((tb, num_sampled), lambda i: (i, 0)),   # negative ids
            pl.BlockSpec((tb, dim), lambda i: (i, 0)),           # poi_in tile
            pl.BlockSpec((vocab, dim), lambda i: (0, 0)),        # full table (VMEM-resident)
        ],
        out_specs=pl.BlockSpec((k1, tb), lambda i: (0, i)),      # lane-dense output
        compiler_params=pltpu.CompilerParams(
            dimension_semantics=("parallel",),   # batch blocks independent (v7x: 2 TCs)
            vmem_limit_bytes=vmem_limit,
        ),
        cost_estimate=cost,
    )(ctx2, neg2, poi_in, table)

    target_loss = out[0, :batch]                                  # (B,)
    negative_loss = jnp.transpose(out[1:, :batch])[:, :, None]    # (B, K, 1)
    return target_loss, negative_loss


def cape_forward(poi_embedding_out_table, embedded_poi_in, context,
                 num_sampled, sample_key):
    """Full forward: negative-sample index generation (glue) + Pallas kernel."""
    poi_num_plus1 = poi_embedding_out_table.shape[0]   # == self.poi_num in torch
    batch = embedded_poi_in.shape[0]

    # torch: FloatTensor(B,K).uniform_(1, self.poi_num).long() -> ints in
    # [1, poi_num].  randint gives the same support without float truncation
    # bias and with no out-of-bounds edge case.
    neg_idx = jax.random.randint(sample_key, (batch, num_sampled),
                                 1, poi_num_plus1, dtype=jnp.int32)

    return cape_forward_pallas(embedded_poi_in, poi_embedding_out_table,
                               context, neg_idx), neg_idx


if __name__ == "__main__":
    # --- deterministic parameter / input setup (synthetic, no checkpoint) ---
    poi_num = 50          # module uses poi_num + 1 rows
    poi_embed_dim = 32
    cat_num = 10
    cat_embed_dim = 16
    batch = 24
    num_sampled = 8

    key = jax.random.PRNGKey(0)
    k_poi, k_cat, k_ffw, k_ffb, k_in, k_ctx, k_smp = jax.random.split(key, 7)

    # nn.Embedding(poi_num+1, D, padding_idx=0): N(0,1) init, row 0 zeroed.
    poi_table = jax.random.normal(k_poi, (poi_num + 1, poi_embed_dim),
                                  dtype=jnp.float32).at[0].set(0.0)
    # cat embedding + ff linear exist in __init__ but are unused by forward().
    cat_table = jax.random.normal(k_cat, (cat_num + 1, cat_embed_dim),
                                  dtype=jnp.float32).at[0].set(0.0)
    ff_w = jax.random.normal(k_ffw, (cat_embed_dim, poi_embed_dim + cat_embed_dim),
                             dtype=jnp.float32) * 0.05
    ff_b = jax.random.normal(k_ffb, (cat_embed_dim,), dtype=jnp.float32) * 0.05

    embedded_poi_in = jax.random.normal(k_in, (batch, poi_embed_dim),
                                        dtype=jnp.float32)
    context = jax.random.randint(k_ctx, (batch,), 1, poi_num + 1, dtype=jnp.int32)

    # --- run kernel ---
    (target_loss, negative_loss), neg_idx = cape_forward(
        poi_table, embedded_poi_in, context, num_sampled, k_smp)
    target_loss = jax.block_until_ready(target_loss)
    negative_loss = jax.block_until_ready(negative_loss)

    # --- reference check in plain JAX (same gathers / same sampled indices) ---
    poi_out_emb = jnp.take(poi_table, context, axis=0)
    samples_emb = jnp.take(poi_table, neg_idx, axis=0)
    ref_target = jnp.sum(embedded_poi_in * poi_out_emb, axis=1)
    ref_negative = -jnp.sum(samples_emb * embedded_poi_in[:, None, :],
                            axis=-1)[:, :, None]

    assert target_loss.shape == (batch,)
    assert negative_loss.shape == (batch, num_sampled, 1)
    np.testing.assert_allclose(np.asarray(target_loss), np.asarray(ref_target),
                               rtol=1e-4, atol=1e-4)
    np.testing.assert_allclose(np.asarray(negative_loss), np.asarray(ref_negative),
                               rtol=1e-4, atol=1e-4)
    print("KERNEL_OK")
</pallas_src>

<mosaic_0001>
module attributes {stable_mosaic.version = 11 : i64} {
  func.func @_cape_kernel(%arg0: i32, %arg1: memref<24x1xi32, #tpu.memory_space<vmem>>, %arg2: memref<24x8xi32, #tpu.memory_space<vmem>>, %arg3: memref<24x32xf32, #tpu.memory_space<vmem>>, %arg4: memref<51x32xf32, #tpu.memory_space<vmem>>, %arg5: memref<9x24xf32, #tpu.memory_space<vmem>>) attributes {dimension_semantics = [#tpu.dimension_semantics<parallel>], iteration_bounds = array<i64: 1>, scalar_prefetch = 0 : i64, scratch_operands = 0 : i64, tpu.core_type = #tpu.core_type<tc>, window_params = [{transform_indices = @transform_0, window_bounds = array<i64: 24, 1>}, {transform_indices = @transform_1, window_bounds = array<i64: 24, 8>}, {transform_indices = @transform_2, window_bounds = array<i64: 24, 32>}, {pipeline_mode = #tpu.pipeline_mode<synchronous>, transform_indices = @transform_3, window_bounds = array<i64: 51, 32>}, {transform_indices = @transform_4, window_bounds = array<i64: 9, 24>}]} {
    %c0 = arith.constant 0 : index
    %c0_0 = arith.constant 0 : index
    %0 = vector.load %arg3[%c0, %c0_0] : memref<24x32xf32, #tpu.memory_space<vmem>>, vector<24x32xf32>
    %c0_1 = arith.constant 0 : index
    %c0_2 = arith.constant 0 : index
    %1 = vector.load %arg4[%c0_1, %c0_2] : memref<51x32xf32, #tpu.memory_space<vmem>>, vector<51x32xf32>
    %cst = arith.constant dense<0.000000e+00> : vector<24x51xf32>
    %2 = tpu.matmul %0, %1, %cst {dimension_numbers = #tpu.dot_dimension_numbers<[1], [1], [0], [0], [0, 0, 1, 0], [], []>, precision = #tpu.contract_precision<fp32>} : vector<24x32xf32>, vector<51x32xf32>, vector<24x51xf32> -> vector<24x51xf32>
    %3 = tpu.iota {dimensions = array<i32: 1>} : vector<24x51xi32>
    %c0_3 = arith.constant 0 : index
    %c0_4 = arith.constant 0 : index
    %4 = vector.load %arg1[%c0_3, %c0_4] : memref<24x1xi32, #tpu.memory_space<vmem>>, vector<24x1xi32>
    %5 = vector.broadcast %4 : vector<24x1xi32> to vector<24x51xi32>
    %6 = arith.cmpi eq, %3, %5 : vector<24x51xi32>
    %cst_5 = arith.constant 0.000000e+00 : f32
    %7 = vector.broadcast %cst_5 : f32 to vector<24x51xf32>
    %8 = arith.select %6, %2, %7 : vector<24x51xi1>, vector<24x51xf32>
    %cst_6 = arith.constant dense<0.000000e+00> : vector<24xf32>
    %9 = vector.multi_reduction <add>, %8, %cst_6 [1] : vector<24x51xf32> to vector<24xf32>
    %c0_7 = arith.constant 0 : index
    %c0_8 = arith.constant 0 : index
    %10 = vector.load %arg5[%c0_7, %c0_8] : memref<9x24xf32, #tpu.memory_space<vmem>>, vector<1x24xf32>
    %11 = vector.shape_cast %10 : vector<1x24xf32> to vector<24xf32>
    %12 = vector.shape_cast %9 : vector<24xf32> to vector<1x24xf32>
    tpu.vector_store %arg5[%c0_7, %c0_8], %12 {strides = array<i32>} : memref<9x24xf32, #tpu.memory_space<vmem>>, vector<1x24xf32>,
    %c0_9 = arith.constant 0 : index
    %c0_10 = arith.constant 0 : index
    %13 = vector.load %arg2[%c0_9, %c0_10] : memref<24x8xi32, #tpu.memory_space<vmem>>, vector<24x8xi32>
    %14 = vector.extract_strided_slice %13 {offsets = [0, 0], sizes = [24, 1], strides = [1, 1]} : vector<24x8xi32> to vector<24x1xi32>
    %15 = vector.broadcast %14 : vector<24x1xi32> to vector<24x51xi32>
    %16 = arith.cmpi eq, %3, %15 : vector<24x51xi32>
    %cst_11 = arith.constant 0.000000e+00 : f32
    %17 = vector.broadcast %cst_11 : f32 to vector<24x51xf32>
    %18 = arith.select %16, %2, %17 : vector<24x51xi1>, vector<24x51xf32>
    %cst_12 = arith.constant dense<0.000000e+00> : vector<24xf32>
    %19 = vector.multi_reduction <add>, %18, %cst_12 [1] : vector<24x51xf32> to vector<24xf32>
    %cst_13 = arith.constant 0.000000e+00 : f32
    %20 = vector.broadcast %cst_13 : f32 to vector<24xf32>
    %21 = arith.subf %20, %19 : vector<24xf32>
    %c1 = arith.constant 1 : index
    %c0_14 = arith.constant 0 : index
    %22 = vector.load %arg5[%c1, %c0_14] : memref<9x24xf32, #tpu.memory_space<vmem>>, vector<1x24xf32>
    %23 = vector.shape_cast %22 : vector<1x24xf32> to vector<24xf32>
    %24 = vector.shape_cast %21 : vector<24xf32> to vector<1x24xf32>
    tpu.vector_store %arg5[%c1, %c0_14], %24 {strides = array<i32>} : memref<9x24xf32, #tpu.memory_space<vmem>>, vector<1x24xf32>,
    %25 = vector.extract_strided_slice %13 {offsets = [0, 1], sizes = [24, 1], strides = [1, 1]} : vector<24x8xi32> to vector<24x1xi32>
    %26 = vector.broadcast %25 : vector<24x1xi32> to vector<24x51xi32>
    %27 = arith.cmpi eq, %3, %26 : vector<24x51xi32>
    %cst_15 = arith.constant 0.000000e+00 : f32
    %28 = vector.broadcast %cst_15 : f32 to vector<24x51xf32>
    %29 = arith.select %27, %2, %28 : vector<24x51xi1>, vector<24x51xf32>
    %cst_16 = arith.constant dense<0.000000e+00> : vector<24xf32>
    %30 = vector.multi_reduction <add>, %29, %cst_16 [1] : vector<24x51xf32> to vector<24xf32>
    %cst_17 = arith.constant 0.000000e+00 : f32
    %31 = vector.broadcast %cst_17 : f32 to vector<24xf32>
    %32 = arith.subf %31, %30 : vector<24xf32>
    %c2 = arith.constant 2 : index
    %c0_18 = arith.constant 0 : index
    %33 = vector.load %arg5[%c2, %c0_18] : memref<9x24xf32, #tpu.memory_space<vmem>>, vector<1x24xf32>
    %34 = vector.shape_cast %33 : vector<1x24xf32> to vector<24xf32>
    %35 = vector.shape_cast %32 : vector<24xf32> to vector<1x24xf32>
    tpu.vector_store %arg5[%c2, %c0_18], %35 {strides = array<i32>} : memref<9x24xf32, #tpu.memory_space<vmem>>, vector<1x24xf32>,
    %36 = vector.extract_strided_slice %13 {offsets = [0, 2], sizes = [24, 1], strides = [1, 1]} : vector<24x8xi32> to vector<24x1xi32>
    %37 = vector.broadcast %36 : vector<24x1xi32> to vector<24x51xi32>
    %38 = arith.cmpi eq, %3, %37 : vector<24x51xi32>
    %cst_19 = arith.constant 0.000000e+00 : f32
    %39 = vector.broadcast %cst_19 : f32 to vector<24x51xf32>
    %40 = arith.select %38, %2, %39 : vector<24x51xi1>, vector<24x51xf32>
    %cst_20 = arith.constant dense<0.000000e+00> : vector<24xf32>
    %41 = vector.multi_reduction <add>, %40, %cst_20 [1] : vector<24x51xf32> to vector<24xf32>
    %cst_21 = arith.constant 0.000000e+00 : f32
    %42 = vector.broadcast %cst_21 : f32 to vector<24xf32>
    %43 = arith.subf %42, %41 : vector<24xf32>
    %c3 = arith.constant 3 : index
    %c0_22 = arith.constant 0 : index
    %44 = vector.load %arg5[%c3, %c0_22] : memref<9x24xf32, #tpu.memory_space<vmem>>, vector<1x24xf32>
    %45 = vector.shape_cast %44 : vector<1x24xf32> to vector<24xf32>
    %46 = vector.shape_cast %43 : vector<24xf32> to vector<1x24xf32>
    tpu.vector_store %arg5[%c3, %c0_22], %46 {strides = array<i32>} : memref<9x24xf32, #tpu.memory_space<vmem>>, vector<1x24xf32>,
    %47 = vector.extract_strided_slice %13 {offsets = [0, 3], sizes = [24, 1], strides = [1, 1]} : vector<24x8xi32> to vector<24x1xi32>
    %48 = vector.broadcast %47 : vector<24x1xi32> to vector<24x51xi32>
    %49 = arith.cmpi eq, %3, %48 : vector<24x51xi32>
    %cst_23 = arith.constant 0.000000e+00 : f32
    %50 = vector.broadcast %cst_23 : f32 to vector<24x51xf32>
    %51 = arith.select %49, %2, %50 : vector<24x51xi1>, vector<24x51xf32>
    %cst_24 = arith.constant dense<0.000000e+00> : vector<24xf32>
    %52 = vector.multi_reduction <add>, %51, %cst_24 [1] : vector<24x51xf32> to vector<24xf32>
    %cst_25 = arith.constant 0.000000e+00 : f32
    %53 = vector.broadcast %cst_25 : f32 to vector<24xf32>
    %54 = arith.subf %53, %52 : vector<24xf32>
    %c4 = arith.constant 4 : index
    %c0_26 = arith.constant 0 : index
    %55 = vector.load %arg5[%c4, %c0_26] : memref<9x24xf32, #tpu.memory_space<vmem>>, vector<1x24xf32>
    %56 = vector.shape_cast %55 : vector<1x24xf32> to vector<24xf32>
    %57 = vector.shape_cast %54 : vector<24xf32> to vector<1x24xf32>
    tpu.vector_store %arg5[%c4, %c0_26], %57 {strides = array<i32>} : memref<9x24xf32, #tpu.memory_space<vmem>>, vector<1x24xf32>,
    %58 = vector.extract_strided_slice %13 {offsets = [0, 4], sizes = [24, 1], strides = [1, 1]} : vector<24x8xi32> to vector<24x1xi32>
    %59 = vector.broadcast %58 : vector<24x1xi32> to vector<24x51xi32>
    %60 = arith.cmpi eq, %3, %59 : vector<24x51xi32>
    %cst_27 = arith.constant 0.000000e+00 : f32
    %61 = vector.broadcast %cst_27 : f32 to vector<24x51xf32>
    %62 = arith.select %60, %2, %61 : vector<24x51xi1>, vector<24x51xf32>
    %cst_28 = arith.constant dense<0.000000e+00> : vector<24xf32>
    %63 = vector.multi_reduction <add>, %62, %cst_28 [1] : vector<24x51xf32> to vector<24xf32>
    %cst_29 = arith.constant 0.000000e+00 : f32
    %64 = vector.broadcast %cst_29 : f32 to vector<24xf32>
    %65 = arith.subf %64, %63 : vector<24xf32>
    %c5 = arith.constant 5 : index
    %c0_30 = arith.constant 0 : index
    %66 = vector.load %arg5[%c5, %c0_30] : memref<9x24xf32, #tpu.memory_space<vmem>>, vector<1x24xf32>
    %67 = vector.shape_cast %66 : vector<1x24xf32> to vector<24xf32>
    %68 = vector.shape_cast %65 : vector<24xf32> to vector<1x24xf32>
    tpu.vector_store %arg5[%c5, %c0_30], %68 {strides = array<i32>} : memref<9x24xf32, #tpu.memory_space<vmem>>, vector<1x24xf32>,
    %69 = vector.extract_strided_slice %13 {offsets = [0, 5], sizes = [24, 1], strides = [1, 1]} : vector<24x8xi32> to vector<24x1xi32>
    %70 = vector.broadcast %69 : vector<24x1xi32> to vector<24x51xi32>
    %71 = arith.cmpi eq, %3, %70 : vector<24x51xi32>
    %cst_31 = arith.constant 0.000000e+00 : f32
    %72 = vector.broadcast %cst_31 : f32 to vector<24x51xf32>
    %73 = arith.select %71, %2, %72 : vector<24x51xi1>, vector<24x51xf32>
    %cst_32 = arith.constant dense<0.000000e+00> : vector<24xf32>
    %74 = vector.multi_reduction <add>, %73, %cst_32 [1] : vector<24x51xf32> to vector<24xf32>
    %cst_33 = arith.constant 0.000000e+00 : f32
    %75 = vector.broadcast %cst_33 : f32 to vector<24xf32>
    %76 = arith.subf %75, %74 : vector<24xf32>
    %c6 = arith.constant 6 : index
    %c0_34 = arith.constant 0 : index
    %77 = vector.load %arg5[%c6, %c0_34] : memref<9x24xf32, #tpu.memory_space<vmem>>, vector<1x24xf32>
    %78 = vector.shape_cast %77 : vector<1x24xf32> to vector<24xf32>
    %79 = vector.shape_cast %76 : vector<24xf32> to vector<1x24xf32>
    tpu.vector_store %arg5[%c6, %c0_34], %79 {strides = array<i32>} : memref<9x24xf32, #tpu.memory_space<vmem>>, vector<1x24xf32>,
    %80 = vector.extract_strided_slice %13 {offsets = [0, 6], sizes = [24, 1], strides = [1, 1]} : vector<24x8xi32> to vector<24x1xi32>
    %81 = vector.broadcast %80 : vector<24x1xi32> to vector<24x51xi32>
    %82 = arith.cmpi eq, %3, %81 : vector<24x51xi32>
    %cst_35 = arith.constant 0.000000e+00 : f32
    %83 = vector.broadcast %cst_35 : f32 to vector<24x51xf32>
    %84 = arith.select %82, %2, %83 : vector<24x51xi1>, vector<24x51xf32>
    %cst_36 = arith.constant dense<0.000000e+00> : vector<24xf32>
    %85 = vector.multi_reduction <add>, %84, %cst_36 [1] : vector<24x51xf32> to vector<24xf32>
    %cst_37 = arith.constant 0.000000e+00 : f32
    %86 = vector.broadcast %cst_37 : f32 to vector<24xf32>
    %87 = arith.subf %86, %85 : vector<24xf32>
    %c7 = arith.constant 7 : index
    %c0_38 = arith.constant 0 : index
    %88 = vector.load %arg5[%c7, %c0_38] : memref<9x24xf32, #tpu.memory_space<vmem>>, vector<1x24xf32>
    %89 = vector.shape_cast %88 : vector<1x24xf32> to vector<24xf32>
    %90 = vector.shape_cast %87 : vector<24xf32> to vector<1x24xf32>
    tpu.vector_store %arg5[%c7, %c0_38], %90 {strides = array<i32>} : memref<9x24xf32, #tpu.memory_space<vmem>>, vector<1x24xf32>,
    %91 = vector.extract_strided_slice %13 {offsets = [0, 7], sizes = [24, 1], strides = [1, 1]} : vector<24x8xi32> to vector<24x1xi32>
    %92 = vector.broadcast %91 : vector<24x1xi32> to vector<24x51xi32>
    %93 = arith.cmpi eq, %3, %92 : vector<24x51xi32>
    %cst_39 = arith.constant 0.000000e+00 : f32
    %94 = vector.broadcast %cst_39 : f32 to vector<24x51xf32>
    %95 = arith.select %93, %2, %94 : vector<24x51xi1>, vector<24x51xf32>
    %cst_40 = arith.constant dense<0.000000e+00> : vector<24xf32>
    %96 = vector.multi_reduction <add>, %95, %cst_40 [1] : vector<24x51xf32> to vector<24xf32>
    %cst_41 = arith.constant 0.000000e+00 : f32
    %97 = vector.broadcast %cst_41 : f32 to vector<24xf32>
    %98 = arith.subf %97, %96 : vector<24xf32>
    %c8 = arith.constant 8 : index
    %c0_42 = arith.constant 0 : index
    %99 = vector.load %arg5[%c8, %c0_42] : memref<9x24xf32, #tpu.memory_space<vmem>>, vector<1x24xf32>
    %100 = vector.shape_cast %99 : vector<1x24xf32> to vector<24xf32>
    %101 = vector.shape_cast %98 : vector<24xf32> to vector<1x24xf32>
    tpu.vector_store %arg5[%c8, %c0_42], %101 {strides = array<i32>} : memref<9x24xf32, #tpu.memory_space<vmem>>, vector<1x24xf32>,
    return
  }
  func.func @transform_0(%arg0: i32) -> (i32, i32) {
    %c0_i32 = arith.constant 0 : i32
    %c0_i32_0 = arith.constant 0 : i32
    return %arg0, %c0_i32 : i32, i32
  }
  func.func @transform_1(%arg0: i32) -> (i32, i32) {
    %c0_i32 = arith.constant 0 : i32
    %c0_i32_0 = arith.constant 0 : i32
    return %arg0, %c0_i32 : i32, i32
  }
  func.func @transform_2(%arg0: i32) -> (i32, i32) {
    %c0_i32 = arith.constant 0 : i32
    %c0_i32_0 = arith.constant 0 : i32
    return %arg0, %c0_i32 : i32, i32
  }
  func.func @transform_3(%arg0: i32) -> (i32, i32) {
    %c0_i32 = arith.constant 0 : i32
    %c0_i32_0 = arith.constant 0 : i32
    %c0_i32_1 = arith.constant 0 : i32
    return %c0_i32, %c0_i32_0 : i32, i32
  }
  func.func @transform_4(%arg0: i32) -> (i32, i32) {
    %c0_i32 = arith.constant 0 : i32
    %c0_i32_0 = arith.constant 0 : i32
    return %c0_i32, %arg0 : i32, i32
  }
}

</mosaic_0001>

<bundles_post_ra>
// kernel: tpu_custom_call.1
= control target key start
LH: loop header
LB: loop body
LE: loop exit
PB: predicated region body
PF: predicated region fallthrough
CT: control target
= control target key end

     0   :  { %vm28_vm0 = vcmask 261120   ;;  %v1444_v3 = vmov 0.0|0.0   ;;  %s1901_s0 = inlined_call_operand.vmem [shape: s32[24,1], index: 0, kind: input, shape index: {}]   ;;  %s1902_s1 = inlined_call_operand.vmem [shape: s32[24,8], index: 1, kind: input, shape index: {}]   ;;  %s1903_s2 = inlined_call_operand.vmem [shape: f32[24,32], index: 2, kind: input, shape index: {}]   ;;  %s1904_s3 = inlined_call_operand.vmem [shape: f32[51,32], index: 3, kind: input, shape index: {}]   ;;  %s1905_s4 = inlined_call_operand.hbm [shape: f32[9,24], index: 4, kind: output, shape index: {}]  }
   0x1   :  { %v21_v0 = vld [vmem:[%s1904_s3] sm:$0xff]  ;;  %v22_v1 = vld [vmem:[%s1904_s3 + $0x8] sm:$0xff]  ;;  %v23_v2 = vld [vmem:[%s1904_s3 + $0x10] sm:$0xff]  ;;  %1308 = vmatprep.subr.bf16.mxu1 %v1444_v3  ;;  %1335 = vmatprep.subr.bf16.mxu0 %v1444_v3 }
   0x2   :  { %v39_v4 = vsel %vm28_vm0, %v21_v0, 0  ;;  %v42_v5 = vsel %vm28_vm0, %v22_v1, 0  ;;  %v24_v6 = vld [vmem:[%s1904_s3 + $0x18] sm:$0xff]  ;;  %v45_v9 = vsel %vm28_vm0, %v23_v2, 0  ;;  %v18_v14 = vld [vmem:[%s1903_s2] sm:$0xff] }
   0x3   :  { %v60_v7 = vand.u32 4294901760, %v39_v4  ;;  %v63_v8 = vand.u32 4294901760, %v42_v5  ;;  %v48_v10 = vsel %vm28_vm0, %v24_v6, 0  ;;  %v66_v12 = vand.u32 4294901760, %v45_v9 }
   0x4   :  { %v69_v13 = vand.u32 4294901760, %v48_v10 }
   0x5   :  { %v1501_v11 = vpack.c.bf16 %v63_v8, %v60_v7 }
   0x7   :  { %1310 = vmatpush3.bf16.xpose.msra.mxu1 %v1501_v11  ;;  %1337 = vmatpush3.bf16.xpose.msra.mxu0 %v1501_v11 }
   0x8   :  { %1311 = vmatprep.subr.bf16.mxu1 %v1444_v3  ;;  %1338 = vmatprep.subr.bf16.mxu0 %v1444_v3 }
   0x9   :  { %9 = vsyncpa [#allocation3], 0  ;;  %v25_v15 = vld [vmem:[%s1904_s3 + $0x20] sm:$0xff]  ;;  %v26_v16 = vld [vmem:[%s1904_s3 + $0x28] sm:$0xff]  ;;  %vm1445_vm1 = vmmov 0   ;;  %v1446_v17 = vmov 0.0   ;;  %v1520_v18 = vpack.c.bf16 %v69_v13, %v66_v12  ;;  %v1528_v23 = vsub.f32 %v39_v4, %v60_v7 }
   0xa   :  { %1184 = vmatprep.mubr.msk.f32.mxu1 %vm1445_vm1, %v1446_v17  ;;  %1253 = vmatprep.mubr.msk.f32.mxu0 %vm1445_vm1, %v1446_v17  ;;  %v30_v19 = vsel %vm28_vm0, %v18_v14, 0  ;;  %v51_v20 = vsel %vm28_vm0, %v25_v15, 0  ;;  %v54_v21 = vsel %vm28_vm0, %v26_v16, 0  ;;  %v19_v22 = vld [vmem:[%s1903_s2 + $0x8] sm:$0xff]  ;;  %v1532_v25 = vsub.f32 %v42_v5, %v63_v8  ;;  %v20_v29 = vld [vmem:[%s1903_s2 + $0x10] sm:$0xff]  ;;  %v671_v31 = vld [vmem:[%s1901_s0] sm:$0xff] }
   0xb   :  { %v1530_v24 = vand.u32 4294901760, %v30_v19  ;;  %v72_v26 = vand.u32 4294901760, %v51_v20  ;;  %v75_v27 = vand.u32 4294901760, %v54_v21  ;;  %v33_v28 = vsel %vm28_vm0, %v19_v22, 0  ;;  %v673_v30 = vld [vmem:[%s1901_s0 + $0x10] sm:$0xff]  ;;  %v1572_v44 = vld [vmem:[%s1902_s1] sm:$0xff] }
   0xc   :  { %v1551_v33 = vand.u32 4294901760, %v33_v28  ;;  %v164_v35 = vand.u32 4294901760, %v1528_v23  ;;  %v171_v36 = vand.u32 4294901760, %v1532_v25  ;;  %v36_v37 = vsel %vm28_vm0, %v20_v29, 0  ;;  %v27_v39 = vld [vmem:[%s1904_s3 + $0x30] sm:$0x7] }
   0xd   :  { %v1549_v32 = vsub.f32 %v30_v19, %v1530_v24  ;;  %v1553_v34 = vpack.c.bf16 %v75_v27, %v72_v26  ;;  %v1447_v38 = vmov 0   ;;  %v1561_v40 = vsub.f32 %v45_v9, %v66_v12  ;;  %v672_v45 = vld [vmem:[%s1901_s0 + $0x8] sm:$0xff]  ;;  %v1597_v54 = vld [vmem:[%s1902_s1 + $0x10] sm:$0xff] }
   0xe   :  { %1404 = vset.pattern.permute.xlu1 %v1447_v38  ;;  %1403 = vset.pattern.permute.xlu0 %v1447_v38  ;;  %v1565_v42 = vsub.f32 %v33_v28, %v1551_v33  ;;  %v1567_v43 = vand.u32 4294901760, %v36_v37  ;;  %v1577_v46 = vsub.f32 %v48_v10, %v69_v13  ;;  %v57_v47 = vsel %vm28_vm0, %v27_v39, 0  ;;  %v1602_v55 = vld [vmem:[%s1902_s1 + $0x8] sm:$0xff]  ;;  %s1455_s1 = smov [#allocation2]  }
   0xf   :  { %1313 = vmatpush3.bf16.xpose.msra.mxu1 %v1520_v18  ;;  %1340 = vmatpush3.bf16.xpose.msra.mxu0 %v1520_v18  ;;  %v133_v41 = vand.u32 4294901760, %v1549_v32  ;;  %v165_v48 = vsub.f32 %v1528_v23, %v164_v35  ;;  %v172_v49 = vsub.f32 %v1532_v25, %v171_v36  ;;  %v1587_v50 = vand.u32 4294901760, %v57_v47  ;;  %s1099_s18 = sshll.u32 %s1455_s1, 4  ;;  %s1100_s18 = int_to_ptr.vmem [resolvable:$true] %s1099_s18 }
  0x10   :  { %1314 = vmatprep.subr.bf16.mxu1 %v1444_v3  ;;  %1341 = vmatprep.subr.bf16.mxu0 %v1444_v3  ;;  %v143_v52 = vand.u32 4294901760, %v1565_v42  ;;  %v1592_v53 = vsub.f32 %v36_v37, %v1567_v43  ;;  %v178_v58 = vand.u32 4294901760, %v1561_v40  ;;  %v185_v59 = vand.u32 4294901760, %v1577_v46  ;;  %s1420_s19 = scalar_lea.vmem %s1100_s18, 256  ;;  %p1425_p1 = scmp.lt.s32.totalorder %s1100_s18, %s1100_s18 }
  0x11   :  { %681 = vperm.xlu1 %1404, %v673_v30   ;;  %675 = vperm.xlu0 %1403, %v671_v31   ;;  %v134_v51 = vsub.f32 %v1549_v32, %v133_v41  ;;  %v166_v56 = vand.u32 4294901760, %v165_v48  ;;  %v173_v57 = vand.u32 4294901760, %v172_v49  ;;  %v1606_v60 = vsub.f32 %v51_v20, %v72_v26  ;;  %p1421_p0 = scmp.ne.s32.totalorder %s1100_s18, %s1420_s19  ;;  %p1426_p2 = scmp.lt.s32.totalorder %s1420_s19, %s1420_s19 }
  0x12   :  { %v1608_v61 = vsub.f32 %v54_v21, %v75_v27  ;;  %v1345_v62 = vpack.c.bf16 %v171_v36, %v164_v35  ;;  %v144_v0 = vsub.f32 %v1565_v42, %v143_v52  ;;  %v153_v1 = vand.u32 4294901760, %v1592_v53 }
  0x13   :  { %v135_v63 = vand.u32 4294901760, %v134_v51  ;;  %v1318_v2 = vpack.c.bf16 %v173_v57, %v166_v56  ;;  %v179_v4 = vsub.f32 %v1561_v40, %v178_v58  ;;  %v186_v5 = vsub.f32 %v1577_v46, %v185_v59  ;;  %p1427_p3 = por %p1426_p2, %p1425_p1 }
  0x14   :  { %v1448_v6 = vmov 1   ;;  %v145_v7 = vand.u32 4294901760, %v144_v0  ;;  %v154_v8 = vsub.f32 %v1592_v53, %v153_v1  ;;  %v192_v12 = vand.u32 4294901760, %v1606_v60 }
  0x15   :  { %727 = vperm.xlu1 %1404, %v1572_v44   ;;  %678 = vperm.xlu0 %1403, %v672_v45   ;;  %v180_v9 = vand.u32 4294901760, %v179_v4  ;;  %v187_v10 = vand.u32 4294901760, %v186_v5  ;;  %v199_v13 = vand.u32 4294901760, %v1608_v61  ;;  %v1348_v14 = vpack.c.bf16 %v185_v59, %v178_v58  ;;  %p1428_p4 = pnand %p1427_p3, %p1421_p0 }
  0x16   :  { %v155_v15 = vand.u32 4294901760, %v154_v8  ;;  %v193_v19 = vsub.f32 %v1606_v60, %v192_v12  ;;  %v1638_v21 = vsub.f32 %v57_v47, %v1587_v50  ;;  %v1449_v27 = vmov 2  }
  0x17   :  { %1316 = vmatpush3.bf16.xpose.msra.mxu1 %v1553_v34  ;;  %1343 = vmatpush3.bf16.xpose.msra.mxu0 %v1553_v34  ;;  %v1321_v16 = vpack.c.bf16 %v187_v10, %v180_v9  ;;  %v200_v20 = vsub.f32 %v1608_v61, %v199_v13  ;;  %v1351_v29 = vpack.c.bf16 %v199_v13, %v192_v12  ;;  %v1450_v35 = vmov 4  }
  0x18   :  { %1182 = vmatprep.subr.mxu1 %v1446_v17  ;;  %1251 = vmatprep.subr.mxu0 %v1446_v17  ;;  %v194_v22 = vand.u32 4294901760, %v193_v19  ;;  %v206_v30 = vand.u32 4294901760, %v1638_v21  ;;  %v1327_v37 = vpack.c.bf16 %v1532_v25, %v1528_v23  ;;  %v1451_v38 = vmov 3  }
  0x19   :  { %733 = vperm.xlu1 %1404, %v1597_v54   ;;  %730 = vperm.xlu0 %1403, %v1602_v55   ;;  %v201_v26 = vand.u32 4294901760, %v200_v20  ;;  %v1330_v23 = vpack.c.bf16 %v1577_v46, %v1561_v40  ;;  %v669_v40 = vlaneseq  ;;  %vm689_vm3 = vcmask 416768  }
  0x1a   :  { %v207_v31 = vsub.f32 %v1638_v21, %v206_v30 }
  0x1b   :  { %v1324_v28 = vpack.c.bf16 %v201_v26, %v194_v22 }
  0x1c   :  { %v208_v36 = vand.u32 4294901760, %v207_v31 }
  0x1d   :  { %1405 = vset.pattern.permute.xlu1 %v1448_v6  ;;  %1406 = vset.pattern.permute.xlu0 %v1448_v6 }
  0x1e   :  { %773 = vperm.xlu1 %1405, %v1572_v44   ;;  %776 = vperm.xlu0 %1406, %v1602_v55  }
  0x1f   :  { %1183 = vmatpush3.xpose.msra.mxu1 %v1587_v50  ;;  %1252 = vmatpush3.xpose.msra.mxu0 %v1587_v50 }
  0x20   :  { %1317 = vmatprep.subr.bf16.mxu1 %v1444_v3  ;;  %1344 = vmatprep.subr.bf16.mxu0 %v1444_v3 }
  0x22   :  { %1185 = vmatmul.mubr.f32.vlgmr.msra.gmra.mrb[0].mxu1 %v135_v63  ;;  %1254 = vmatmul.mubr.f32.vlgmr.msra.gmra.mrb[0].mxu0 %v133_v41  ;;  %v1720_v41 = vand.u32 127, %v669_v40 }
  0x23   :  { %1319 = vmatpush3.bf16.xpose.msra.mxu1 %v1318_v2  ;;  %1346 = vmatpush3.bf16.xpose.msra.mxu0 %v1345_v62 }
  0x24   :  { %1320 = vmatprep.subr.bf16.mxu1 %v1444_v3  ;;  %1347 = vmatprep.subr.bf16.mxu0 %v1444_v3 }
  0x25   :  { %1187 = vmatprep.mubr.msk.f32.mxu1 %vm1445_vm1, %v1446_v17  ;;  %1256 = vmatprep.mubr.msk.f32.mxu0 %vm1445_vm1, %v1446_v17 }
  0x26   :  { %1188 = vmatmul.mubr.f32.gmra.mrb[2].mxu1 %v145_v7  ;;  %1257 = vmatmul.mubr.f32.gmra.mrb[2].mxu0 %v143_v52 }
  0x27   :  { %1190 = vmatprep.mubr.msk.f32.mxu1 %vm1445_vm1, %v1446_v17  ;;  %1259 = vmatprep.mubr.msk.f32.mxu0 %vm1445_vm1, %v1446_v17 }
  0x28   :  { %779 = vperm.xlu1 %1405, %v1597_v54   ;;  %1408 = vset.pattern.permute.xlu0 %v1449_v27 }
  0x29   :  { %822 = vperm.xlu0 %1408, %v1602_v55  }
  0x2a   :  { %1191 = vmatmul.mubr.f32.gmra.mrb[4].mxu1 %v155_v15  ;;  %1260 = vmatmul.mubr.f32.gmra.mrb[4].mxu0 %v153_v1 }
  0x2b   :  { %1322 = vmatpush3.bf16.xpose.msra.mxu1 %v1321_v16  ;;  %1349 = vmatpush3.bf16.xpose.msra.mxu0 %v1348_v14 }
  0x2c   :  { %1323 = vmatprep.subr.bf16.mxu1 %v1444_v3  ;;  %1350 = vmatprep.subr.bf16.mxu0 %v1444_v3 }
  0x2d   :  { %1207 = vmatprep.mubr.msk.f32.mxu1 %vm1445_vm1, %v1446_v17  ;;  %1276 = vmatprep.mubr.msk.f32.mxu0 %vm1445_vm1, %v1446_v17 }
  0x2e   :  { %1407 = vset.pattern.permute.xlu1 %v1449_v27  ;;  %1410 = vset.pattern.permute.xlu0 %v1450_v35 }
  0x2f   :  { %819 = vperm.xlu1 %1407, %v1572_v44   ;;  %911 = vperm.xlu0 %1410, %v1572_v44  }
  0x33   :  { %1325 = vmatpush3.bf16.xpose.msra.mxu1 %v1324_v28  ;;  %1352 = vmatpush3.bf16.xpose.msra.mxu0 %v1351_v29 }
  0x34   :  { %1205 = vmatprep.subr.mxu1 %v1446_v17  ;;  %1274 = vmatprep.subr.mxu0 %v1446_v17 }
  0x35   :  { %825 = vperm.xlu1 %1407, %v1597_v54  }
  0x39   :  { %1409 = vset.pattern.permute.xlu1 %v1451_v38 }
  0x3a   :  { %865 = vperm.xlu1 %1409, %v1572_v44  }
  0x3b   :  { %1206 = vmatpush3.xpose.msra.mxu1 %v208_v36  ;;  %1275 = vmatpush3.xpose.msra.mxu0 %v206_v30 }
  0x3c   :  { %1326 = vmatprep.subr.bf16.mxu1 %v1444_v3  ;;  %1353 = vmatprep.subr.bf16.mxu0 %v1444_v3 }
  0x3e   :  { %1208 = vmatmul.mubr.f32.vlgmr.msra.gmra.mrb[0].mxu1 %v1530_v24  ;;  %1277 = vmatmul.mubr.f32.vlgmr.msra.gmra.mrb[0].mxu0 %v1530_v24 }
  0x3f   :  { %1328 = vmatpush3.bf16.xpose.msra.mxu1 %v1327_v37  ;;  %1355 = vmatpush3.bf16.xpose.msra.mxu0 %v1501_v11  ;;  %v1333_v11 = vpack.c.bf16 %v1608_v61, %v1606_v60 }
  0x40   :  { %1329 = vmatprep.subr.bf16.mxu1 %v1444_v3  ;;  %1356 = vmatprep.subr.bf16.mxu0 %v1444_v3 }
  0x41   :  { %1210 = vmatprep.mubr.msk.f32.mxu1 %vm1445_vm1, %v1446_v17  ;;  %1279 = vmatprep.mubr.msk.f32.mxu0 %vm1445_vm1, %v1446_v17 }
  0x42   :  { %1211 = vmatmul.mubr.f32.gmra.mrb[2].mxu1 %v1551_v33  ;;  %1280 = vmatmul.mubr.f32.gmra.mrb[2].mxu0 %v1551_v33 }
  0x43   :  { %1213 = vmatprep.mubr.msk.f32.mxu1 %vm1445_vm1, %v1446_v17  ;;  %1282 = vmatprep.mubr.msk.f32.mxu0 %vm1445_vm1, %v1446_v17 }
  0x44   :  { %868 = vperm.xlu1 %1409, %v1602_v55  }
  0x46   :  { %1214 = vmatmul.mubr.f32.gmra.mrb[4].mxu1 %v1567_v43  ;;  %1283 = vmatmul.mubr.f32.gmra.mrb[4].mxu0 %v1567_v43 }
  0x47   :  { %1331 = vmatpush3.bf16.xpose.msra.mxu1 %v1330_v23  ;;  %1358 = vmatpush3.bf16.xpose.msra.mxu0 %v1520_v18 }
  0x48   :  { %1332 = vmatprep.subr.bf16.mxu1 %v1444_v3  ;;  %1359 = vmatprep.subr.bf16.mxu0 %v1444_v3  ;;  %v1452_v3 = vmov 5  }
  0x49   :  { %1230 = vmatprep.mubr.msk.f32.mxu1 %vm1445_vm1, %v1446_v17  ;;  %1299 = vmatprep.mubr.msk.f32.mxu0 %vm1445_vm1, %v1446_v17 }
  0x4a   :  { %871 = vperm.xlu1 %1409, %v1597_v54   ;;  %1412 = vset.pattern.permute.xlu0 %v1452_v3 }
  0x4e   :  { %1411 = vset.pattern.permute.xlu1 %v1450_v35 }
  0x4f   :  { %1334 = vmatpush3.bf16.xpose.msra.mxu1 %v1333_v11  ;;  %1361 = vmatpush3.bf16.xpose.msra.mxu0 %v1553_v34 }
  0x50   :  { %1228 = vmatprep.subr.mxu1 %v1446_v17  ;;  %1297 = vmatprep.subr.mxu0 %v1446_v17 }
  0x51   :  { %914 = vperm.xlu1 %1411, %v1602_v55  }
  0x55   :  { %917 = vperm.xlu1 %1411, %v1597_v54  }
  0x57   :  { %1229 = vmatpush3.xpose.msra.mxu1 %v1638_v21  ;;  %1298 = vmatpush3.xpose.msra.mxu0 %v1587_v50 }
  0x59   :  { %1413 = vset.pattern.permute.xlu1 %v1452_v3 }
  0x5a   :  { %1231 = vmatmul.mubr.f32.vlgmr.msra.gmra.mrb[0].mxu1 %v1549_v32  ;;  %1300 = vmatmul.mubr.f32.vlgmr.msra.gmra.mrb[0].mxu0 %v1530_v24 }
  0x5b   :  { %1233 = vmatprep.mubr.msk.f32.mxu1 %vm1445_vm1, %v1446_v17  ;;  %1302 = vmatprep.mubr.msk.f32.mxu0 %vm1445_vm1, %v1446_v17 }
  0x5e   :  { %1234 = vmatmul.mubr.f32.gmra.mrb[2].mxu1 %v1565_v42  ;;  %1303 = vmatmul.mubr.f32.gmra.mrb[2].mxu0 %v1551_v33 }
  0x5f   :  { %1236 = vmatprep.mubr.msk.f32.mxu1 %vm1445_vm1, %v1446_v17  ;;  %1305 = vmatprep.mubr.msk.f32.mxu0 %vm1445_vm1, %v1446_v17 }
  0x62   :  { %1237 = vmatmul.mubr.f32.gmra.mrb[4].mxu1 %v1592_v53  ;;  %1306 = vmatmul.mubr.f32.gmra.mrb[4].mxu0 %v1567_v43 }
  0x90   :  { %v1713_v18 = vpop.permute.xlu1 %681  ;;  %v676_v34 = vpop.permute.xlu0 %675 }
  0x91   :  { %vm683_vm2 = vcmp.eq.s32.totalorder %v1720_v41, %v676_v34  ;;  %vm685_vm13 = vcmp.eq.s32.totalorder %v1720_v41, %v1713_v18 }
  0x94   :  { %v728_v24 = vpop.permute.xlu1 %727  ;;  %v679_v17 = vpop.permute.xlu0 %678 }
  0x95   :  { %vm735_vm4 = vcmp.eq.s32.totalorder %v1720_v41, %v728_v24  ;;  %vm684_vm5 = vcmp.eq.s32.totalorder %v1720_v41, %v679_v17 }
  0x98   :  { %v1715_v25 = vpop.permute.xlu1 %733  ;;  %v731_v43 = vpop.permute.xlu0 %730 }
  0x99   :  { %vm736_vm7 = vcmp.eq.s32.totalorder %v1720_v41, %v731_v43  ;;  %vm737_vm14 = vcmp.eq.s32.totalorder %v1720_v41, %v1715_v25 }
  0x9d   :  { %v774_v32 = vpop.permute.xlu1 %773  ;;  %v777_v61 = vpop.permute.xlu0 %776 }
  0x9e   :  { %vm781_vm6 = vcmp.eq.s32.totalorder %v1720_v41, %v774_v32  ;;  %vm782_vm9 = vcmp.eq.s32.totalorder %v1720_v41, %v777_v61 }
  0xa7   :  { %v1717_v33 = vpop.permute.xlu1 %779 }
  0xa8   :  { %v823_v19 = vpop.permute.xlu0 %822  ;;  %vm783_vm15 = vcmp.eq.s32.totalorder %v1720_v41, %v1717_v33 }
  0xa9   :  { %vm828_vm12 = vcmp.eq.s32.totalorder %v1720_v41, %v823_v19 }
  0xae   :  { %v820_v39 = vpop.permute.xlu1 %819  ;;  %v912_v30 = vpop.permute.xlu0 %911 }
  0xaf   :  { %vm827_vm8 = vcmp.eq.s32.totalorder %v1720_v41, %v820_v39  ;;  %vm919_vm0 = vcmp.eq.s32.totalorder %v1720_v41, %v912_v30 }
  0xb4   :  { %v1722_v42 = vpop.permute.xlu1 %825 }
  0xb5   :  { %vm829_vm1 = vcmp.eq.s32.totalorder %v1720_v41, %v1722_v42 }
  0xb9   :  { %v866_v60 = vpop.permute.xlu1 %865 }
  0xba   :  { %vm873_vm10 = vcmp.eq.s32.totalorder %v1720_v41, %v866_v60 }
  0xc3   :  { %v869_v12 = vpop.permute.xlu1 %868 }
  0xc4   :  { %vm874_vm11 = vcmp.eq.s32.totalorder %v1720_v41, %v869_v12 }
  0xc9   :  { %v872_v29 = vpop.permute.xlu1 %871 }
  0xd0   :  { %v915_v11 = vpop.permute.xlu1 %914 }
  0xd4   :  { %v918_v34 = vpop.permute.xlu1 %917 }
 0x12d   :  { %v361_v45 = vpop.f32.mrb[0].mxu1  ;;  %v653_v46 = vpop.f32.mrb[0].mxu0 }
 0x12e   :  { %v1725_v47 = vadd.f32 %v653_v46, %v361_v45  ;;  %v1232_v48 = vpop.f32.mrb[1].mxu1  ;;  %v1301_v49 = vpop.f32.mrb[1].mxu0  ;;  %v1453_v46 = vmov 6  }
 0x12f   :  { %v1454_v48 = vmov 7  }
 0x130   :  { %v686_v50 = vsel %vm683_vm2, %v1725_v47, 0.0  ;;  %v738_v59 = vsel %vm735_vm4, %v1725_v47, 0.0  ;;  %v784_v7 = vsel %vm781_vm6, %v1725_v47, 0.0  ;;  %v830_v13 = vsel %vm827_vm8, %v1725_v47, 0.0 }
 0x131   :  { %v368_v51 = vpop.f32.mrb[2].mxu1  ;;  %v659_v52 = vpop.f32.mrb[2].mxu0  ;;  %v690_v53 = vsel %vm689_vm3, %v686_v50, 0.0  ;;  %v741_v1 = vsel %vm689_vm3, %v738_v59, 0.0  ;;  %v787_v9 = vsel %vm689_vm3, %v784_v7, 0.0  ;;  %v833_v15 = vsel %vm689_vm3, %v830_v13, 0.0 }
 0x132   :  { %v1730_v56 = vadd.f32 %v659_v52, %v368_v51  ;;  %v1304_v57 = vpop.f32.mrb[3].mxu0  ;;  %691 = vadd.xlane.f32.xlu1 %v690_v53  ;;  %v1235_v58 = vpop.f32.mrb[3].mxu1  ;;  %v876_v20 = vsel %vm873_vm10, %v1725_v47, 0.0  ;;  %v922_v18 = vsel %vm919_vm0, %v1725_v47, 0.0  ;;  %vm875_vm2 = vcmp.eq.s32.totalorder %v1720_v41, %v872_v29 }
 0x133   :  { %v879_v22 = vsel %vm689_vm3, %v876_v20, 0.0  ;;  %v925_v25 = vsel %vm689_vm3, %v922_v18, 0.0  ;;  %vm920_vm4 = vcmp.eq.s32.totalorder %v1720_v41, %v915_v11  ;;  %vm711_vm6 = vcmask 130112  }
 0x134   :  { %v687_v62 = vsel %vm684_vm5, %v1730_v56, 0.0  ;;  %v739_v8 = vsel %vm736_vm7, %v1730_v56, 0.0  ;;  %v785_v14 = vsel %vm782_vm9, %v1730_v56, 0.0  ;;  %v877_v21 = vsel %vm874_vm11, %v1730_v56, 0.0 }
 0x135   :  { %v375_v63 = vpop.f32.mrb[4].mxu1  ;;  %v665_v0 = vpop.f32.mrb[4].mxu0  ;;  %v693_v2 = vsel %vm689_vm3, %v687_v62, 0.0  ;;  %v744_v10 = vsel %vm689_vm3, %v739_v8, 0.0  ;;  %v790_v16 = vsel %vm689_vm3, %v785_v14, 0.0  ;;  %v882_v26 = vsel %vm689_vm3, %v877_v21, 0.0 }
 0x136   :  { %v1739_v4 = vadd.f32 %v665_v0, %v375_v63  ;;  %v1307_v5 = vpop.f32.mrb[5].mxu0  ;;  %742 = vadd.xlane.f32.xlu1 %v741_v1  ;;  %694 = vadd.xlane.f32.xlu0 %v693_v2  ;;  %v1238_v6 = vpop.f32.mrb[5].mxu1  ;;  %v831_v27 = vsel %vm828_vm12, %v1730_v56, 0.0  ;;  %v923_v17 = vsel %vm920_vm4, %v1730_v56, 0.0  ;;  %vm921_vm5 = vcmp.eq.s32.totalorder %v1720_v41, %v918_v34 }
 0x137   :  { %v836_v31 = vsel %vm689_vm3, %v831_v27, 0.0  ;;  %v928_v42 = vsel %vm689_vm3, %v923_v17, 0.0  ;;  %vm718_vm7 = vcmask 195712   ;;  %vm721_vm8 = vcmask 188416  }
 0x138   :  { %v688_v28 = vsel %vm685_vm13, %v1739_v4, 0.0  ;;  %v786_v36 = vsel %vm783_vm15, %v1739_v4, 0.0  ;;  %v740_v37 = vsel %vm737_vm14, %v1739_v4, 0.0  ;;  %v832_v24 = vsel %vm829_vm1, %v1739_v4, 0.0 }
 0x139   :  { %v696_v35 = vsel %vm689_vm3, %v688_v28, 0.0  ;;  %v793_v38 = vsel %vm689_vm3, %v786_v36, 0.0  ;;  %v747_v23 = vsel %vm689_vm3, %v740_v37, 0.0  ;;  %v839_v32 = vsel %vm689_vm3, %v832_v24, 0.0 }
 0x13a   :  { %788 = vadd.xlane.f32.xlu1 %v787_v9  ;;  %745 = vadd.xlane.f32.xlu0 %v744_v10  ;;  %v878_v33 = vsel %vm875_vm2, %v1739_v4, 0.0  ;;  %v924_v43 = vsel %vm921_vm5, %v1739_v4, 0.0 }
 0x13b   :  { %v885_v39 = vsel %vm689_vm3, %v878_v33, 0.0  ;;  %v931_v45 = vsel %vm689_vm3, %v924_v43, 0.0 }
 0x13e   :  { %834 = vadd.xlane.f32.xlu1 %v833_v15  ;;  %791 = vadd.xlane.f32.xlu0 %v790_v16 }
 0x142   :  { %880 = vadd.xlane.f32.xlu1 %v879_v22  ;;  %883 = vadd.xlane.f32.xlu0 %v882_v26 }
 0x146   :  { %837 = vadd.xlane.f32.xlu1 %v836_v31  ;;  %697 = vadd.xlane.f32.xlu0 %v696_v35 }
 0x14a   :  { %794 = vadd.xlane.f32.xlu1 %v793_v38  ;;  %748 = vadd.xlane.f32.xlu0 %v747_v23 }
 0x14e   :  { %926 = vadd.xlane.f32.xlu1 %v925_v25  ;;  %840 = vadd.xlane.f32.xlu0 %v839_v32 }
 0x152   :  { %886 = vadd.xlane.f32.xlu0 %v885_v39 }
 0x156   :  { %929 = vadd.xlane.f32.xlu0 %v928_v42 }
 0x15a   :  { %932 = vadd.xlane.f32.xlu0 %v931_v45 }
 0x15f   :  { %960 = vperm.xlu1 %1413, %v1602_v55  }
 0x163   :  { %1414 = vset.pattern.permute.xlu1 %v1453_v46 }
 0x164   :  { %1003 = vperm.xlu1 %1414, %v1572_v44  }
 0x168   :  { %1006 = vperm.xlu1 %1414, %v1602_v55  }
 0x16c   :  { %1415 = vset.pattern.permute.xlu1 %v1454_v48 }
 0x16d   :  { %1049 = vperm.xlu1 %1415, %v1572_v44  }
 0x170   :  { %957 = vperm.xlu0 %1412, %v1572_v44   ;;  %v706_v44 = vadd.s32 4294967288, %v1720_v41 }
 0x171   :  { %1052 = vperm.xlu1 %1415, %v1602_v55   ;;  %v703_v55 = vshrl.u32 %v669_v40, 7 }
 0x173   :  { %v1801_v59 = vsub.s32 %v706_v44, %v703_v55  ;;  %v1804_v60 = vsub.s32 %v1720_v41, %v703_v55 }
 0x174   :  { %1419 = vset.pattern.permute.xlu0 %v1454_v48 }
 0x175   :  { %1416 = vset.pattern.permute.xlu1 %v1452_v3  ;;  %v713_v3 = vadd.s32 4294967280, %v1720_v41 }
 0x176   :  { %963 = vperm.xlu1 %1416, %v1597_v54  }
 0x177   :  { %v1806_v62 = vsub.s32 %v713_v3, %v703_v55 }
 0x17a   :  { %1417 = vset.pattern.permute.xlu1 %v1453_v46 }
 0x17b   :  { %1009 = vperm.xlu1 %1417, %v1597_v54  }
 0x17f   :  { %1418 = vset.pattern.permute.xlu1 %v1454_v48 }
 0x180   :  { %1055 = vperm.xlu1 %1418, %v1597_v54  }
 0x1bf   :  { %v692_v49 = vpop.xlane.xlu1 %691 }
 0x1c0   :  { %v705_v1 = vrot.slane %v692_v49, %v1804_v60 }
 0x1c3   :  { %v743_v50 = vpop.xlane.xlu1 %742  ;;  %v695_v51 = vpop.xlane.xlu0 %694 }
 0x1c4   :  { %v710_v63 = vrot.slane %v695_v51, %v1801_v59  ;;  %v750_v6 = vsub.f32 0.0, %v743_v50 }
 0x1c6   :  { %v712_v8 = vsel %vm711_vm6, %v710_v63, %v705_v1  ;;  %v759_v19 = vrot.slane %v750_v6, %v1804_v60 }
 0x1c7   :  { %v789_v52 = vpop.xlane.xlu1 %788  ;;  %v746_v53 = vpop.xlane.xlu0 %745 }
 0x1c8   :  { %v751_v0 = vsub.f32 0.0, %v746_v53  ;;  %v796_v9 = vsub.f32 0.0, %v789_v52 }
 0x1ca   :  { %v763_v10 = vrot.slane %v751_v0, %v1801_v59  ;;  %v805_v22 = vrot.slane %v796_v9, %v1804_v60 }
 0x1cb   :  { %v835_v57 = vpop.xlane.xlu1 %834  ;;  %v792_v58 = vpop.xlane.xlu0 %791 }
 0x1cc   :  { %v797_v40 = vsub.f32 0.0, %v792_v58  ;;  %v842_v26 = vsub.f32 0.0, %v835_v57  ;;  %v764_v27 = vsel %vm711_vm6, %v763_v10, %v759_v19 }
 0x1ce   :  { %v809_v13 = vrot.slane %v797_v40, %v1801_v59  ;;  %v851_v24 = vrot.slane %v842_v26, %v1804_v60 }
 0x1cf   :  { %v881_v61 = vpop.xlane.xlu1 %880  ;;  %v884_v54 = vpop.xlane.xlu0 %883 }
 0x1d0   :  { %v810_v30 = vsel %vm711_vm6, %v809_v13, %v805_v22  ;;  %v888_v31 = vsub.f32 0.0, %v881_v61  ;;  %v889_v35 = vsub.f32 0.0, %v884_v54 }
 0x1d2   :  { %v897_v32 = vrot.slane %v888_v31, %v1804_v60  ;;  %v901_v33 = vrot.slane %v889_v35, %v1801_v59 }
 0x1d3   :  { %v838_v2 = vpop.xlane.xlu1 %837  ;;  %v698_v5 = vpop.xlane.xlu0 %697 }
 0x1d4   :  { %v717_v7 = vrot.slane %v698_v5, %v1806_v62  ;;  %v843_v14 = vsub.f32 0.0, %v838_v2  ;;  %v902_v49 = vsel %vm711_vm6, %v901_v33, %v897_v32 }
 0x1d6   :  { %v719_v12 = vsel %vm718_vm7, %v717_v7, %v712_v8  ;;  %v855_v36 = vrot.slane %v843_v14, %v1801_v59 }
 0x1d7   :  { %722 = vst.msk [vmem:[#allocation2] sm:$0x1] %vm721_vm8, %v719_v12  ;;  %v795_v15 = vpop.xlane.xlu1 %794  ;;  %v749_v16 = vpop.xlane.xlu0 %748 }
 0x1d8   :  { %v798_v20 = vsub.f32 0.0, %v795_v15  ;;  %v752_v21 = vsub.f32 0.0, %v749_v16  ;;  %v856_v34 = vsel %vm711_vm6, %v855_v36, %v851_v24 }
 0x1da   :  { %v814_v28 = vrot.slane %v798_v20, %v1806_v62  ;;  %v768_v29 = vrot.slane %v752_v21, %v1806_v62 }
 0x1db   :  { %v927_v37 = vpop.xlane.xlu1 %926  ;;  %v841_v38 = vpop.xlane.xlu0 %840 }
 0x1dc   :  { %v815_v23 = vsel %vm718_vm7, %v814_v28, %v810_v30  ;;  %v769_v11 = vsel %vm718_vm7, %v768_v29, %v764_v27  ;;  %v844_v18 = vsub.f32 0.0, %v841_v38  ;;  %v934_v44 = vsub.f32 0.0, %v927_v37 }
 0x1dd   :  { %817 = vst.msk [vmem:[#allocation2 + $0x2] sm:$0x1] %vm721_vm8, %v815_v23  ;;  %771 = vst.msk [vmem:[#allocation2 + $0x1] sm:$0x1] %vm721_vm8, %v769_v11 }
 0x1de   :  { %v860_v25 = vrot.slane %v844_v18, %v1806_v62  ;;  %v943_v61 = vrot.slane %v934_v44, %v1804_v60 }
 0x1df   :  { %v961_v39 = vpop.permute.xlu1 %960  ;;  %v887_v17 = vpop.xlane.xlu0 %886 }
 0x1e0   :  { %v861_v42 = vsel %vm718_vm7, %v860_v25, %v856_v34  ;;  %vm966_vm9 = vcmp.eq.s32.totalorder %v1720_v41, %v961_v39  ;;  %v890_v43 = vsub.f32 0.0, %v887_v17 }
 0x1e1   :  { %863 = vst.msk [vmem:[#allocation2 + $0x3] sm:$0x1] %vm721_vm8, %v861_v42  ;;  %v969_v45 = vsel %vm966_vm9, %v1730_v56, 0.0 }
 0x1e2   :  { %v906_v46 = vrot.slane %v890_v43, %v1806_v62  ;;  %v974_v48 = vsel %vm689_vm3, %v969_v45, 0.0 }
 0x1e3   :  { %975 = vadd.xlane.f32.xlu1 %v974_v48  ;;  %v1004_v50 = vpop.permute.xlu1 %1003  ;;  %v930_v51 = vpop.xlane.xlu0 %929 }
 0x1e4   :  { %v907_v52 = vsel %vm718_vm7, %v906_v46, %v902_v49  ;;  %v935_v53 = vsub.f32 0.0, %v930_v51  ;;  %vm1011_vm11 = vcmp.eq.s32.totalorder %v1720_v41, %v1004_v50 }
 0x1e5   :  { %909 = vst.msk [vmem:[#allocation2 + $0x4] sm:$0x1] %vm721_vm8, %v907_v52  ;;  %v1014_v9 = vsel %vm1011_vm11, %v1725_v47, 0.0 }
 0x1e6   :  { %v947_v55 = vrot.slane %v935_v53, %v1801_v59  ;;  %v1017_v12 = vsel %vm689_vm3, %v1014_v9, 0.0 }
 0x1e7   :  { %v1007_v57 = vpop.permute.xlu1 %1006  ;;  %v933_v58 = vpop.xlane.xlu0 %932 }
 0x1e8   :  { %v936_v3 = vsub.f32 0.0, %v933_v58  ;;  %v948_v63 = vsel %vm711_vm6, %v947_v55, %v943_v61  ;;  %vm1012_vm13 = vcmp.eq.s32.totalorder %v1720_v41, %v1007_v57 }
 0x1e9   :  { %v1015_v14 = vsel %vm1012_vm13, %v1730_v56, 0.0 }
 0x1ea   :  { %v952_v54 = vrot.slane %v936_v3, %v1806_v62 }
 0x1ec   :  { %v953_v0 = vsel %vm718_vm7, %v952_v54, %v948_v63  ;;  %v1050_v1 = vpop.permute.xlu1 %1049 }
 0x1ed   :  { %955 = vst.msk [vmem:[#allocation2 + $0x5] sm:$0x1] %vm721_vm8, %v953_v0  ;;  %vm1057_vm10 = vcmp.eq.s32.totalorder %v1720_v41, %v1050_v1 }
 0x1ee   :  { %v1060_v40 = vsel %vm1057_vm10, %v1725_v47, 0.0 }
 0x1ef   :  { %v958_v2 = vpop.permute.xlu0 %957  ;;  %v1063_v5 = vsel %vm689_vm3, %v1060_v40, 0.0 }
 0x1f0   :  { %vm965_vm12 = vcmp.eq.s32.totalorder %v1720_v41, %v958_v2  ;;  %1064 = vadd.xlane.f32.xlu1 %v1063_v5  ;;  %v1053_v6 = vpop.permute.xlu1 %1052 }
 0x1f1   :  { %v968_v7 = vsel %vm965_vm12, %v1725_v47, 0.0  ;;  %vm1058_vm15 = vcmp.eq.s32.totalorder %v1720_v41, %v1053_v6  ;;  %v1020_v47 = vsel %vm689_vm3, %v1015_v14, 0.0 }
 0x1f2   :  { %v971_v8 = vsel %vm689_vm3, %v968_v7, 0.0  ;;  %v1061_v19 = vsel %vm1058_vm15, %v1730_v56, 0.0 }
 0x1f3   :  { %972 = vadd.xlane.f32.xlu0 %v971_v8  ;;  %v1066_v20 = vsel %vm689_vm3, %v1061_v19, 0.0 }
 0x1f5   :  { %v964_v10 = vpop.permute.xlu1 %963 }
 0x1f6   :  { %vm967_vm14 = vcmp.eq.s32.totalorder %v1720_v41, %v964_v10 }
 0x1f7   :  { %1018 = vadd.xlane.f32.xlu0 %v1017_v12  ;;  %v970_v13 = vsel %vm967_vm14, %v1739_v4, 0.0 }
 0x1f8   :  { %v977_v15 = vsel %vm689_vm3, %v970_v13, 0.0 }
 0x1f9   :  { %978 = vadd.xlane.f32.xlu1 %v977_v15 }
 0x1fa   :  { %v1010_v16 = vpop.permute.xlu1 %1009 }
 0x1fb   :  { %1021 = vadd.xlane.f32.xlu0 %v1020_v47  ;;  %vm1013_vm0 = vcmp.eq.s32.totalorder %v1720_v41, %v1010_v16 }
 0x1fc   :  { %v1016_v22 = vsel %vm1013_vm0, %v1739_v4, 0.0 }
 0x1fd   :  { %v1023_v28 = vsel %vm689_vm3, %v1016_v22, 0.0 }
 0x1ff   :  { %v1056_v21 = vpop.permute.xlu1 %1055  ;;  %1067 = vadd.xlane.f32.xlu0 %v1066_v20 }
 0x200   :  { %vm1059_vm1 = vcmp.eq.s32.totalorder %v1720_v41, %v1056_v21 }
 0x201   :  { %v1062_v26 = vsel %vm1059_vm1, %v1739_v4, 0.0 }
 0x202   :  { %v1069_v27 = vsel %vm689_vm3, %v1062_v26, 0.0 }
 0x203   :  { %1070 = vadd.xlane.f32.xlu1 %v1069_v27  ;;  %1024 = vadd.xlane.f32.xlu0 %v1023_v28 }
 0x270   :  { %v976_v29 = vpop.xlane.xlu1 %975 }
 0x271   :  { %v981_v35 = vsub.f32 0.0, %v976_v29 }
 0x273   :  { %v993_v41 = vrot.slane %v981_v35, %v1801_v59 }
 0x27d   :  { %v1065_v30 = vpop.xlane.xlu1 %1064 }
 0x27e   :  { %v1072_v34 = vsub.f32 0.0, %v1065_v30 }
 0x280   :  { %v973_v56 = vpop.xlane.xlu0 %972  ;;  %v1081_v49 = vrot.slane %v1072_v34, %v1804_v60 }
 0x281   :  { %v980_v31 = vsub.f32 0.0, %v973_v56 }
 0x283   :  { %v989_v37 = vrot.slane %v980_v31, %v1804_v60 }
 0x284   :  { %v1019_v36 = vpop.xlane.xlu0 %1018 }
 0x285   :  { %v994_v18 = vsel %vm711_vm6, %v993_v41, %v989_v37  ;;  %v1026_v39 = vsub.f32 0.0, %v1019_v36 }
 0x286   :  { %v979_v38 = vpop.xlane.xlu1 %978 }
 0x287   :  { %v982_v23 = vsub.f32 0.0, %v979_v38  ;;  %v1035_v50 = vrot.slane %v1026_v39, %v1804_v60 }
 0x288   :  { %v1022_v11 = vpop.xlane.xlu0 %1021 }
 0x289   :  { %v998_v4 = vrot.slane %v982_v23, %v1806_v62  ;;  %v1027_v25 = vsub.f32 0.0, %v1022_v11 }
 0x28b   :  { %v999_v24 = vsel %vm718_vm7, %v998_v4, %v994_v18  ;;  %v1039_v17 = vrot.slane %v1027_v25, %v1801_v59 }
 0x28c   :  { %1001 = vst.msk [vmem:[#allocation2 + $0x6] sm:$0x1] %vm721_vm8, %v999_v24  ;;  %v1068_v32 = vpop.xlane.xlu0 %1067 }
 0x28d   :  { %v1073_v33 = vsub.f32 0.0, %v1068_v32  ;;  %v1040_v53 = vsel %vm711_vm6, %v1039_v17, %v1035_v50 }
 0x28f   :  { %v1085_v42 = vrot.slane %v1073_v33, %v1801_v59 }
 0x290   :  { %v1071_v43 = vpop.xlane.xlu1 %1070  ;;  %v1025_v45 = vpop.xlane.xlu0 %1024 }
 0x291   :  { %v1074_v46 = vsub.f32 0.0, %v1071_v43  ;;  %v1028_v48 = vsub.f32 0.0, %v1025_v45  ;;  %v1086_v44 = vsel %vm711_vm6, %v1085_v42, %v1081_v49 }
 0x293   :  { %v1090_v51 = vrot.slane %v1074_v46, %v1806_v62  ;;  %v1044_v52 = vrot.slane %v1028_v48, %v1806_v62 }
 0x295   :  { %v1091_v59 = vsel %vm718_vm7, %v1090_v51, %v1086_v44  ;;  %v1045_v55 = vsel %vm718_vm7, %v1044_v52, %v1040_v53 }
 0x296   :  { %1093 = vst.msk [vmem:[#allocation2 + $0x8] sm:$0x1] %vm721_vm8, %v1091_v59  ;;  %1047 = vst.msk [vmem:[#allocation2 + $0x7] sm:$0x1] %vm721_vm8, %v1045_v55 }
 0x297   :  { %1431 = shalt.err (!%p1428_p4)
}
 0x298   :  { %s1432_s22 = scalar_lea.hbm %s1905_s4, 256 }
 0x299   :  { %p1433_p5 = scmp.ne.s32.totalorder %s1905_s4, %s1432_s22  ;;  %p1436_p6 = scmp.lt.u32.totalorder %s1432_s22, %s1905_s4 }
 0x29b   :  { %p1438_p7 = pnand %p1436_p6, %p1433_p5 }
 0x29d   :  { %1441 = shalt.err (!%p1438_p7)
}
 0x29e   :  { %s1456_s27 = smov 128   ;;  %s1457_s28 = smov 8  }
 0x29f   :  { %1105 = dma.vmem_to_hbm [thread:$0]  %s1100_s18, 256, %s1905_s4, [#allocation3], %s1456_s27, %s1456_s27, %s1457_s28  }
 0x2a0   :  { %1442 = dma.done.wait [#allocation3], 256  }
 0x2a1   :  { %1443 = vsyncadd [#allocation3], 4294967040 }
 0x2a2   :  { %1109 = vsyncpa [#allocation3], 1 }

</bundles_post_ra>
